<compile_context>
chip_gen: v5e
topology: v5e:2x2
jax: 0.10.0
libtpu: 0.0.40
codegen_flags: <defaults>
</compile_context>

<pallas_src>
import jax
import jax.numpy as jnp
from jax.experimental import pallas as pl
from jax.experimental.pallas import tpu as pltpu


def _make_fused_gru_gcn_kernel(n_layer: int, hidden: int):
    """Build the fused kernel for a stack of `n_layer` graph-GRU-GCN layers."""
    H = hidden

    def kernel(adj_ref, x_ref, h_ref, *rest):
        # rest = [W_x_0, W_hzr_0, W_hh_0, b_0, ..., W_x_{L-1}, ..., b_{L-1}, h_out_ref]
        h_out_ref = rest[-1]
        wrefs = rest[:-1]

        adj = adj_ref[...]                    # (N, N) normalized adjacency
        x_in = x_ref[...]                     # (N, D_in) layer-0 input
        for i in range(n_layer):              # unrolled at trace time
            w_x = wrefs[4 * i + 0][...]       # (D_in_i, 3H)  [xz | xr | xh]
            w_hzr = wrefs[4 * i + 1][...]     # (H, 2H)       [hz | hr]
            w_hh = wrefs[4 * i + 2][...]      # (H, H)
            b = wrefs[4 * i + 3][...]         # (1, 3H)       folded b_x + b_h

            h_i = h_ref[i]                    # (N, H)

            # Shared neighborhood aggregation, reused by all gates of this layer.
            xp = jnp.dot(adj, x_in, preferred_element_type=jnp.float32)   # (N, D_in)
            hp = jnp.dot(adj, h_i, preferred_element_type=jnp.float32)    # (N, H)

            gx = jnp.dot(xp, w_x, preferred_element_type=jnp.float32)     # (N, 3H)
            ghzr = jnp.dot(hp, w_hzr, preferred_element_type=jnp.float32) # (N, 2H)

            # Full-slab sigmoid (z and r together), then split.
            zr = jax.nn.sigmoid(gx[:, :2 * H] + ghzr + b[:, :2 * H])      # (N, 2H)
            z = zr[:, :H]
            r = zr[:, H:2 * H]

            rhp = jnp.dot(adj, r * h_i, preferred_element_type=jnp.float32)  # (N, H)
            h_tilde = jnp.tanh(
                gx[:, 2 * H:]
                + jnp.dot(rhp, w_hh, preferred_element_type=jnp.float32)
                + b[:, 2 * H:])

            h_new = z * h_i + (1.0 - z) * h_tilde
            h_out_ref[i] = h_new.astype(h_out_ref.dtype)
            x_in = h_new                      # feeds the next layer

    return kernel


def graph_gru_gcn_forward(x, adj, h, params):
    """Fused forward of graph_gru_gcn. Returns (out, h_out) == (h_out, h_out)."""
    n_layer, n_nodes, hidden = h.shape
    flat_params = []
    for (w_x, w_hzr, w_hh, b) in params:
        flat_params.extend([w_x, w_hzr, w_hh, b])

    vmem = pl.BlockSpec(memory_space=pltpu.MemorySpace.VMEM)
    kernel = _make_fused_gru_gcn_kernel(n_layer, hidden)

    h_out = pl.pallas_call(
        kernel,
        out_shape=jax.ShapeDtypeStruct((n_layer, n_nodes, hidden), jnp.float32),
        in_specs=[vmem] * (3 + len(flat_params)),
        out_specs=vmem,
    )(adj, x, h, *flat_params)
    return h_out, h_out


def build_norm_adj(edge_index, num_nodes, improved=True, dtype=jnp.float32):
    """Dense symmetrically-normalized adjacency used by every GCNConv."""
    # TODO(synk): the sparse scatter_add / gather of GCN message passing has no
    # clean Pallas equivalent at this scale; densify once in plain JAX instead.
    row, col = edge_index[0], edge_index[1]
    loop = jnp.arange(num_nodes, dtype=row.dtype)
    row = jnp.concatenate([row, loop])
    col = jnp.concatenate([col, loop])
    loop_w = jnp.full((num_nodes,), 2.0 if improved else 1.0, dtype)
    edge_weight = jnp.concatenate(
        [jnp.ones((edge_index.shape[1],), dtype), loop_w])
    deg = jnp.zeros((num_nodes,), dtype).at[row].add(edge_weight)
    deg_inv_sqrt = jnp.where(deg > 0, jax.lax.rsqrt(deg), 0.0)
    norm = deg_inv_sqrt[row] * edge_weight * deg_inv_sqrt[col]
    adj = jnp.zeros((num_nodes, num_nodes), dtype).at[row, col].add(norm)
    return adj


def init_graph_gru_gcn_params(key, input_size, hidden_size, n_layer):
    """Glorot-uniform GCN weights (PyTorch `glorot`), zero GCN biases, fused."""
    H = hidden_size

    def glorot(k, fan_in, fan_out):
        s = (6.0 / (fan_in + fan_out)) ** 0.5
        return jax.random.uniform(k, (fan_in, fan_out), jnp.float32, -s, s)

    params = []
    for i in range(n_layer):
        d_in = input_size if i == 0 else H
        key, kxz, kxr, kxh, khz, khr, khh = jax.random.split(key, 7)
        w_x = jnp.concatenate(
            [glorot(kxz, d_in, H), glorot(kxr, d_in, H), glorot(kxh, d_in, H)],
            axis=1)                                           # (d_in, 3H)
        w_hzr = jnp.concatenate(
            [glorot(khz, H, H), glorot(khr, H, H)], axis=1)   # (H, 2H)
        w_hh = glorot(khh, H, H)                              # (H, H)
        # GCNConv biases are zero-initialized in PyTorch; keep the folded slot.
        b = jnp.zeros((1, 3 * H), jnp.float32)
        params.append((w_x, w_hzr, w_hh, b))
    return params


def reference_forward(x, adj, h, params):
    """Pure-JAX reference mirroring the PyTorch op order (adj @ (x @ W) + b)."""
    n_layer, _, H = h.shape
    outs = []
    x_in = x
    for i in range(n_layer):
        w_x, w_hzr, w_hh, b = params[i]
        h_i = h[i]
        gx = adj @ (x_in @ w_x)
        ghzr = adj @ (h_i @ w_hzr)
        z = jax.nn.sigmoid(gx[:, :H] + ghzr[:, :H] + b[:, :H])
        r = jax.nn.sigmoid(gx[:, H:2 * H] + ghzr[:, H:2 * H] + b[:, H:2 * H])
        h_tilde = jnp.tanh(gx[:, 2 * H:] + adj @ ((r * h_i) @ w_hh) + b[:, 2 * H:])
        outs.append(z * h_i + (1.0 - z) * h_tilde)
        x_in = outs[-1]
    h_out = jnp.stack(outs, axis=0)
    return h_out, h_out


if __name__ == "__main__":
    n_nodes = 16
    input_size = 16
    hidden_size = 32
    n_layer = 2

    key = jax.random.PRNGKey(0)
    key, kp, kx, kh, ke1, ke2 = jax.random.split(key, 6)

    params = init_graph_gru_gcn_params(kp, input_size, hidden_size, n_layer)
    x = jax.random.normal(kx, (n_nodes, input_size), jnp.float32)
    h = jax.random.normal(kh, (n_layer, n_nodes, hidden_size), jnp.float32)

    # Deterministic small graph: bidirectional ring + a few random chords.
    ring = jnp.arange(n_nodes, dtype=jnp.int32)
    src = jnp.concatenate([ring, (ring + 1) % n_nodes,
                           jax.random.randint(ke1, (8,), 0, n_nodes, jnp.int32)])
    dst = jnp.concatenate([(ring + 1) % n_nodes, ring,
                           jax.random.randint(ke2, (8,), 0, n_nodes, jnp.int32)])
    edge_index = jnp.stack([src, dst])             # (2, 40)
    adj = build_norm_adj(edge_index, n_nodes)      # shared A_hat for every GCNConv

    fwd = jax.jit(graph_gru_gcn_forward)
    out, h_out = fwd(x, adj, h, params)
    jax.block_until_ready(out)
    jax.block_until_ready(h_out)

    assert out.shape == (n_layer, n_nodes, hidden_size)
    assert h_out.shape == (n_layer, n_nodes, hidden_size)

    ref_out, _ = reference_forward(x, adj, h, params)
    max_err = float(jnp.max(jnp.abs(out - ref_out)))
    assert jnp.allclose(out, ref_out, rtol=1e-4, atol=1e-4), max_err

    print("KERNEL_OK")
</pallas_src>

<mosaic_0001>
module attributes {stable_mosaic.version = 11 : i64} {
  func.func @kernel(%arg0: memref<16x16xf32, #tpu.memory_space<vmem>>, %arg1: memref<16x16xf32, #tpu.memory_space<vmem>>, %arg2: memref<2x16x32xf32, #tpu.memory_space<vmem>>, %arg3: memref<16x96xf32, #tpu.memory_space<vmem>>, %arg4: memref<32x64xf32, #tpu.memory_space<vmem>>, %arg5: memref<32x32xf32, #tpu.memory_space<vmem>>, %arg6: memref<1x96xf32, #tpu.memory_space<vmem>>, %arg7: memref<32x96xf32, #tpu.memory_space<vmem>>, %arg8: memref<32x64xf32, #tpu.memory_space<vmem>>, %arg9: memref<32x32xf32, #tpu.memory_space<vmem>>, %arg10: memref<1x96xf32, #tpu.memory_space<vmem>>, %arg11: memref<2x16x32xf32, #tpu.memory_space<vmem>>) attributes {dimension_semantics = [], scalar_prefetch = 0 : i64, scratch_operands = 0 : i64, tpu.core_type = #tpu.core_type<tc>} {
    %c0 = arith.constant 0 : index
    %c0_0 = arith.constant 0 : index
    %0 = vector.load %arg0[%c0, %c0_0] : memref<16x16xf32, #tpu.memory_space<vmem>>, vector<16x16xf32>
    %c0_1 = arith.constant 0 : index
    %c0_2 = arith.constant 0 : index
    %1 = vector.load %arg1[%c0_1, %c0_2] : memref<16x16xf32, #tpu.memory_space<vmem>>, vector<16x16xf32>
    %c0_3 = arith.constant 0 : index
    %c0_4 = arith.constant 0 : index
    %2 = vector.load %arg3[%c0_3, %c0_4] : memref<16x96xf32, #tpu.memory_space<vmem>>, vector<16x96xf32>
    %c0_5 = arith.constant 0 : index
    %c0_6 = arith.constant 0 : index
    %3 = vector.load %arg4[%c0_5, %c0_6] : memref<32x64xf32, #tpu.memory_space<vmem>>, vector<32x64xf32>
    %c0_7 = arith.constant 0 : index
    %c0_8 = arith.constant 0 : index
    %4 = vector.load %arg5[%c0_7, %c0_8] : memref<32x32xf32, #tpu.memory_space<vmem>>, vector<32x32xf32>
    %c0_9 = arith.constant 0 : index
    %c0_10 = arith.constant 0 : index
    %5 = vector.load %arg6[%c0_9, %c0_10] : memref<1x96xf32, #tpu.memory_space<vmem>>, vector<1x96xf32>
    %c0_11 = arith.constant 0 : index
    %c0_12 = arith.constant 0 : index
    %c0_13 = arith.constant 0 : index
    %6 = vector.load %arg2[%c0_11, %c0_12, %c0_13] : memref<2x16x32xf32, #tpu.memory_space<vmem>>, vector<1x16x32xf32>
    %7 = vector.shape_cast %6 : vector<1x16x32xf32> to vector<16x32xf32>
    %cst = arith.constant dense<0.000000e+00> : vector<16x16xf32>
    %8 = tpu.matmul %0, %1, %cst {dimension_numbers = #tpu.dot_dimension_numbers<[1], [0], [0], [1], [0, 0, 1, 1], [], []>} : vector<16x16xf32>, vector<16x16xf32>, vector<16x16xf32> -> vector<16x16xf32>
    %cst_14 = arith.constant dense<0.000000e+00> : vector<16x32xf32>
    %9 = tpu.matmul %0, %7, %cst_14 {dimension_numbers = #tpu.dot_dimension_numbers<[1], [0], [0], [1], [0, 0, 1, 1], [], []>} : vector<16x16xf32>, vector<16x32xf32>, vector<16x32xf32> -> vector<16x32xf32>
    %cst_15 = arith.constant dense<0.000000e+00> : vector<16x96xf32>
    %10 = tpu.matmul %8, %2, %cst_15 {dimension_numbers = #tpu.dot_dimension_numbers<[1], [0], [0], [1], [0, 0, 1, 1], [], []>} : vector<16x16xf32>, vector<16x96xf32>, vector<16x96xf32> -> vector<16x96xf32>
    %cst_16 = arith.constant dense<0.000000e+00> : vector<16x64xf32>
    %11 = tpu.matmul %9, %3, %cst_16 {dimension_numbers = #tpu.dot_dimension_numbers<[1], [0], [0], [1], [0, 0, 1, 1], [], []>} : vector<16x32xf32>, vector<32x64xf32>, vector<16x64xf32> -> vector<16x64xf32>
    %12 = vector.extract_strided_slice %10 {offsets = [0, 0], sizes = [16, 64], strides = [1, 1]} : vector<16x96xf32> to vector<16x64xf32>
    %13 = arith.addf %12, %11 : vector<16x64xf32>
    %14 = vector.extract_strided_slice %5 {offsets = [0, 0], sizes = [1, 64], strides = [1, 1]} : vector<1x96xf32> to vector<1x64xf32>
    %15 = vector.broadcast %14 : vector<1x64xf32> to vector<16x64xf32>
    %16 = arith.addf %13, %15 : vector<16x64xf32>
    %17 = arith.negf %16 : vector<16x64xf32>
    %18 = math.exp %17 : vector<16x64xf32>
    %cst_17 = arith.constant 1.000000e+00 : f32
    %19 = vector.broadcast %cst_17 : f32 to vector<16x64xf32>
    %20 = arith.addf %19, %18 : vector<16x64xf32>
    %21 = arith.divf %19, %20 : vector<16x64xf32>
    %22 = vector.extract_strided_slice %21 {offsets = [0, 0], sizes = [16, 32], strides = [1, 1]} : vector<16x64xf32> to vector<16x32xf32>
    %23 = vector.extract_strided_slice %21 {offsets = [0, 32], sizes = [16, 32], strides = [1, 1]} : vector<16x64xf32> to vector<16x32xf32>
    %24 = arith.mulf %23, %7 : vector<16x32xf32>
    %cst_18 = arith.constant dense<0.000000e+00> : vector<16x32xf32>
    %25 = tpu.matmul %0, %24, %cst_18 {dimension_numbers = #tpu.dot_dimension_numbers<[1], [0], [0], [1], [0, 0, 1, 1], [], []>} : vector<16x16xf32>, vector<16x32xf32>, vector<16x32xf32> -> vector<16x32xf32>
    %26 = vector.extract_strided_slice %10 {offsets = [0, 64], sizes = [16, 32], strides = [1, 1]} : vector<16x96xf32> to vector<16x32xf32>
    %cst_19 = arith.constant dense<0.000000e+00> : vector<16x32xf32>
    %27 = tpu.matmul %25, %4, %cst_19 {dimension_numbers = #tpu.dot_dimension_numbers<[1], [0], [0], [1], [0, 0, 1, 1], [], []>} : vector<16x32xf32>, vector<32x32xf32>, vector<16x32xf32> -> vector<16x32xf32>
    %28 = arith.addf %26, %27 : vector<16x32xf32>
    %29 = vector.extract_strided_slice %5 {offsets = [0, 64], sizes = [1, 32], strides = [1, 1]} : vector<1x96xf32> to vector<1x32xf32>
    %30 = vector.broadcast %29 : vector<1x32xf32> to vector<16x32xf32>
    %31 = arith.addf %28, %30 : vector<16x32xf32>
    %32 = math.tanh %31 : vector<16x32xf32>
    %33 = arith.mulf %22, %7 : vector<16x32xf32>
    %cst_20 = arith.constant 1.000000e+00 : f32
    %34 = vector.broadcast %cst_20 : f32 to vector<16x32xf32>
    %35 = arith.subf %34, %22 : vector<16x32xf32>
    %36 = arith.mulf %35, %32 : vector<16x32xf32>
    %37 = arith.addf %33, %36 : vector<16x32xf32>
    %c0_21 = arith.constant 0 : index
    %c0_22 = arith.constant 0 : index
    %c0_23 = arith.constant 0 : index
    %38 = vector.load %arg11[%c0_21, %c0_22, %c0_23] : memref<2x16x32xf32, #tpu.memory_space<vmem>>, vector<1x16x32xf32>
    %39 = vector.shape_cast %38 : vector<1x16x32xf32> to vector<16x32xf32>
    %40 = vector.shape_cast %37 : vector<16x32xf32> to vector<1x16x32xf32>
    tpu.vector_store %arg11[%c0_21, %c0_22, %c0_23], %40 {strides = array<i32>} : memref<2x16x32xf32, #tpu.memory_space<vmem>>, vector<1x16x32xf32>,
    %c0_24 = arith.constant 0 : index
    %c0_25 = arith.constant 0 : index
    %41 = vector.load %arg7[%c0_24, %c0_25] : memref<32x96xf32, #tpu.memory_space<vmem>>, vector<32x96xf32>
    %c0_26 = arith.constant 0 : index
    %c0_27 = arith.constant 0 : index
    %42 = vector.load %arg8[%c0_26, %c0_27] : memref<32x64xf32, #tpu.memory_space<vmem>>, vector<32x64xf32>
    %c0_28 = arith.constant 0 : index
    %c0_29 = arith.constant 0 : index
    %43 = vector.load %arg9[%c0_28, %c0_29] : memref<32x32xf32, #tpu.memory_space<vmem>>, vector<32x32xf32>
    %c0_30 = arith.constant 0 : index
    %c0_31 = arith.constant 0 : index
    %44 = vector.load %arg10[%c0_30, %c0_31] : memref<1x96xf32, #tpu.memory_space<vmem>>, vector<1x96xf32>
    %c1 = arith.constant 1 : index
    %c0_32 = arith.constant 0 : index
    %c0_33 = arith.constant 0 : index
    %45 = vector.load %arg2[%c1, %c0_32, %c0_33] : memref<2x16x32xf32, #tpu.memory_space<vmem>>, vector<1x16x32xf32>
    %46 = vector.shape_cast %45 : vector<1x16x32xf32> to vector<16x32xf32>
    %cst_34 = arith.constant dense<0.000000e+00> : vector<16x32xf32>
    %47 = tpu.matmul %0, %37, %cst_34 {dimension_numbers = #tpu.dot_dimension_numbers<[1], [0], [0], [1], [0, 0, 1, 1], [], []>} : vector<16x16xf32>, vector<16x32xf32>, vector<16x32xf32> -> vector<16x32xf32>
    %cst_35 = arith.constant dense<0.000000e+00> : vector<16x32xf32>
    %48 = tpu.matmul %0, %46, %cst_35 {dimension_numbers = #tpu.dot_dimension_numbers<[1], [0], [0], [1], [0, 0, 1, 1], [], []>} : vector<16x16xf32>, vector<16x32xf32>, vector<16x32xf32> -> vector<16x32xf32>
    %cst_36 = arith.constant dense<0.000000e+00> : vector<16x96xf32>
    %49 = tpu.matmul %47, %41, %cst_36 {dimension_numbers = #tpu.dot_dimension_numbers<[1], [0], [0], [1], [0, 0, 1, 1], [], []>} : vector<16x32xf32>, vector<32x96xf32>, vector<16x96xf32> -> vector<16x96xf32>
    %cst_37 = arith.constant dense<0.000000e+00> : vector<16x64xf32>
    %50 = tpu.matmul %48, %42, %cst_37 {dimension_numbers = #tpu.dot_dimension_numbers<[1], [0], [0], [1], [0, 0, 1, 1], [], []>} : vector<16x32xf32>, vector<32x64xf32>, vector<16x64xf32> -> vector<16x64xf32>
    %51 = vector.extract_strided_slice %49 {offsets = [0, 0], sizes = [16, 64], strides = [1, 1]} : vector<16x96xf32> to vector<16x64xf32>
    %52 = arith.addf %51, %50 : vector<16x64xf32>
    %53 = vector.extract_strided_slice %44 {offsets = [0, 0], sizes = [1, 64], strides = [1, 1]} : vector<1x96xf32> to vector<1x64xf32>
    %54 = vector.broadcast %53 : vector<1x64xf32> to vector<16x64xf32>
    %55 = arith.addf %52, %54 : vector<16x64xf32>
    %56 = arith.negf %55 : vector<16x64xf32>
    %57 = math.exp %56 : vector<16x64xf32>
    %cst_38 = arith.constant 1.000000e+00 : f32
    %58 = vector.broadcast %cst_38 : f32 to vector<16x64xf32>
    %59 = arith.addf %58, %57 : vector<16x64xf32>
    %60 = arith.divf %58, %59 : vector<16x64xf32>
    %61 = vector.extract_strided_slice %60 {offsets = [0, 0], sizes = [16, 32], strides = [1, 1]} : vector<16x64xf32> to vector<16x32xf32>
    %62 = vector.extract_strided_slice %60 {offsets = [0, 32], sizes = [16, 32], strides = [1, 1]} : vector<16x64xf32> to vector<16x32xf32>
    %63 = arith.mulf %62, %46 : vector<16x32xf32>
    %cst_39 = arith.constant dense<0.000000e+00> : vector<16x32xf32>
    %64 = tpu.matmul %0, %63, %cst_39 {dimension_numbers = #tpu.dot_dimension_numbers<[1], [0], [0], [1], [0, 0, 1, 1], [], []>} : vector<16x16xf32>, vector<16x32xf32>, vector<16x32xf32> -> vector<16x32xf32>
    %65 = vector.extract_strided_slice %49 {offsets = [0, 64], sizes = [16, 32], strides = [1, 1]} : vector<16x96xf32> to vector<16x32xf32>
    %cst_40 = arith.constant dense<0.000000e+00> : vector<16x32xf32>
    %66 = tpu.matmul %64, %43, %cst_40 {dimension_numbers = #tpu.dot_dimension_numbers<[1], [0], [0], [1], [0, 0, 1, 1], [], []>} : vector<16x32xf32>, vector<32x32xf32>, vector<16x32xf32> -> vector<16x32xf32>
    %67 = arith.addf %65, %66 : vector<16x32xf32>
    %68 = vector.extract_strided_slice %44 {offsets = [0, 64], sizes = [1, 32], strides = [1, 1]} : vector<1x96xf32> to vector<1x32xf32>
    %69 = vector.broadcast %68 : vector<1x32xf32> to vector<16x32xf32>
    %70 = arith.addf %67, %69 : vector<16x32xf32>
    %71 = math.tanh %70 : vector<16x32xf32>
    %72 = arith.mulf %61, %46 : vector<16x32xf32>
    %cst_41 = arith.constant 1.000000e+00 : f32
    %73 = vector.broadcast %cst_41 : f32 to vector<16x32xf32>
    %74 = arith.subf %73, %61 : vector<16x32xf32>
    %75 = arith.mulf %74, %71 : vector<16x32xf32>
    %76 = arith.addf %72, %75 : vector<16x32xf32>
    %c1_42 = arith.constant 1 : index
    %c0_43 = arith.constant 0 : index
    %c0_44 = arith.constant 0 : index
    %77 = vector.load %arg11[%c1_42, %c0_43, %c0_44] : memref<2x16x32xf32, #tpu.memory_space<vmem>>, vector<1x16x32xf32>
    %78 = vector.shape_cast %77 : vector<1x16x32xf32> to vector<16x32xf32>
    %79 = vector.shape_cast %76 : vector<16x32xf32> to vector<1x16x32xf32>
    tpu.vector_store %arg11[%c1_42, %c0_43, %c0_44], %79 {strides = array<i32>} : memref<2x16x32xf32, #tpu.memory_space<vmem>>, vector<1x16x32xf32>,
    return
  }
}

</mosaic_0001>

<bundles_post_ra>
// kernel: graph_gru_gcn_forward.1
= control target key start
LH: loop header
LB: loop body
LE: loop exit
PB: predicated region body
PF: predicated region fallthrough
CT: control target
= control target key end

     0   :  { %16 = vsyncpa [#allocation3], 0  ;;  %s1299_s0 = inlined_call_operand.hbm [shape: f32[16,16], index: 0, kind: input, shape index: {}]   ;;  %s1300_s1 = inlined_call_operand.hbm [shape: f32[16,16], index: 1, kind: input, shape index: {}]   ;;  %s1301_s2 = inlined_call_operand.hbm [shape: f32[2,16,32], index: 2, kind: input, shape index: {}]   ;;  %s1302_s3 = inlined_call_operand.hbm [shape: f32[16,96], index: 3, kind: input, shape index: {}]   ;;  %s1303_s4 = inlined_call_operand.hbm [shape: f32[32,64], index: 4, kind: input, shape index: {}]   ;;  %s1304_s5 = inlined_call_operand.hbm [shape: f32[32,32], index: 5, kind: input, shape index: {}]   ;;  %s1305_s6 = inlined_call_operand.vmem [shape: f32[1,96], index: 6, kind: input, shape index: {}]   ;;  %s1306_s7 = inlined_call_operand.hbm [shape: f32[32,96], index: 7, kind: input, shape index: {}]   ;;  %s1307_s8 = inlined_call_operand.hbm [shape: f32[32,64], index: 8, kind: input, shape index: {}]   ;;  %s1308_s9 = inlined_call_operand.hbm [shape: f32[32,32], index: 9, kind: input, shape index: {}]   ;;  %s1309_s10 = inlined_call_operand.vmem [shape: f32[1,96], index: 10, kind: input, shape index: {}]   ;;  %s1310_s11 = inlined_call_operand.vmem [shape: f32[2,16,32], index: 11, kind: output, shape index: {}]  }
   0x1   :  { %17 = vsyncpa [#allocation5], 0 }
   0x2   :  { %18 = vsyncpa [#allocation8], 0 }
   0x3   :  { %19 = vsyncpa [#allocation11], 0 }
   0x4   :  { %20 = vsyncpa [#allocation14], 0  ;;  %s38_s19 = sshll.u32 %s1300_s1, 4  ;;  %s1037_s20 = smov [#allocation4]   ;;  %s39_s19 = int_to_ptr.hbm [resolvable:$true] %s38_s19 }
   0x5   :  { %s40_s21 = sshll.u32 %s1037_s20, 4  ;;  %s64_s24 = sshll.u32 %s1302_s3, 4  ;;  %s41_s21 = int_to_ptr.vmem [resolvable:$true] %s40_s21  ;;  %s65_s24 = int_to_ptr.hbm [resolvable:$true] %s64_s24 }
   0x6   :  { %s1038_s25 = smov 128   ;;  %s1039_s26 = smov 8  }
   0x7   :  { %46 = dma.hbm_to_vmem [thread:$0]  %s39_s19, 256, %s41_s21, [#allocation5], %s1038_s25, %s1038_s25, %s1039_s26  }
   0x8   :  { %s1040_s27 = smov [#allocation7]   ;;  %s90_s1 = sshll.u32 %s1304_s5, 4  ;;  %s91_s1 = int_to_ptr.hbm [resolvable:$true] %s90_s1 }
   0x9   :  { %s66_s28 = sshll.u32 %s1040_s27, 4  ;;  %s118_s13 = sshll.u32 %s1307_s8, 4  ;;  %s67_s28 = int_to_ptr.vmem [resolvable:$true] %s66_s28  ;;  %s119_s13 = int_to_ptr.hbm [resolvable:$true] %s118_s13 }
   0xa   :  { %72 = dma.hbm_to_vmem [thread:$0]  %s65_s24, 256, %s67_s28, [#allocation8], %s1038_s25, %s1038_s25, %s1039_s26  }
   0xb   :  { %s1041_s14 = smov [#allocation10]   ;;  %s1042_s16 = smov [#allocation13]  }
   0xc   :  { %s92_s15 = sshll.u32 %s1041_s14, 4  ;;  %s120_s5 = sshll.u32 %s1042_s16, 4  ;;  %s93_s15 = int_to_ptr.vmem [resolvable:$true] %s92_s15  ;;  %s121_s5 = int_to_ptr.vmem [resolvable:$true] %s120_s5 }
   0xd   :  { %98 = dma.hbm_to_vmem [thread:$0]  %s91_s1, 512, %s93_s15, [#allocation11], %s1038_s25, %s1038_s25, %s1039_s26  }
   0xe   :  { %s25_s19 = sshll.u32 %s1299_s0, 4  ;;  %s51_s21 = sshll.u32 %s1301_s2, 4  ;;  %s26_s19 = int_to_ptr.hbm [resolvable:$true] %s25_s19  ;;  %s52_s21 = int_to_ptr.hbm [resolvable:$true] %s51_s21 }
   0xf   :  { %126 = dma.hbm_to_vmem [thread:$0]  %s119_s13, 512, %s121_s5, [#allocation14], %s1038_s25, %s1038_s25, %s1039_s26  }
  0x10   :  { %s1043_s22 = smov [#allocation2]   ;;  %s1044_s24 = smov [#allocation6]  }
  0x11   :  { %s27_s23 = sshll.u32 %s1043_s22, 4  ;;  %s53_s0 = sshll.u32 %s1044_s24, 4  ;;  %s28_s23 = int_to_ptr.vmem [resolvable:$true] %s27_s23  ;;  %s54_s0 = int_to_ptr.vmem [resolvable:$true] %s53_s0 }
  0x12   :  { %33 = dma.hbm_to_vmem [thread:$0]  %s26_s19, 256, %s28_s23, [#allocation3], %s1038_s25, %s1038_s25, %s1039_s26  }
  0x13   :  { %s77_s29 = sshll.u32 %s1303_s4, 4  ;;  %s105_s1 = sshll.u32 %s1306_s7, 4  ;;  %s78_s29 = int_to_ptr.hbm [resolvable:$true] %s77_s29  ;;  %s106_s1 = int_to_ptr.hbm [resolvable:$true] %s105_s1 }
  0x14   :  { %59 = dma.hbm_to_vmem [thread:$0]  %s52_s21, 512, %s54_s0, [#allocation5], %s1038_s25, %s1038_s25, %s1039_s26  }
  0x15   :  { %s1045_s3 = smov [#allocation9]   ;;  %s1046_s13 = smov [#allocation12]  }
  0x16   :  { %s79_s12 = sshll.u32 %s1045_s3, 4  ;;  %s107_s4 = sshll.u32 %s1046_s13, 4  ;;  %s80_s12 = int_to_ptr.vmem [resolvable:$true] %s79_s12  ;;  %s108_s4 = int_to_ptr.vmem [resolvable:$true] %s107_s4 }
  0x17   :  { %85 = dma.hbm_to_vmem [thread:$0]  %s78_s29, 512, %s80_s12, [#allocation8], %s1038_s25, %s1038_s25, %s1039_s26  }
  0x18   :  { %s131_s16 = sshll.u32 %s1308_s9, 4  ;;  %s1047_s7 = smov [#allocation15]   ;;  %s132_s16 = int_to_ptr.hbm [resolvable:$true] %s131_s16 }
  0x19   :  { %113 = dma.hbm_to_vmem [thread:$0]  %s106_s1, 512, %s108_s4, [#allocation11], %s1038_s25, %s1038_s25, %s1039_s26  }
  0x1a   :  { %s133_s5 = sshll.u32 %s1047_s7, 4  ;;  %s134_s5 = int_to_ptr.vmem [resolvable:$true] %s133_s5 }
  0x1b   :  { %139 = dma.hbm_to_vmem [thread:$0]  %s132_s16, 512, %s134_s5, [#allocation14], %s1038_s25, %s1038_s25, %s1039_s26  }
  0x1c   :  { %1027 = dma.done.wait [#allocation3], 256  }
  0x1d   :  { %1028 = vsyncadd [#allocation3], 4294967040 }
  0x1e   :  { %1029 = dma.done.wait [#allocation5], 768  }
  0x1f   :  { %1030 = vsyncadd [#allocation5], 4294966528 }
  0x20   :  { %1031 = dma.done.wait [#allocation8], 768  }
  0x21   :  { %1032 = vsyncadd [#allocation8], 4294966528 }
  0x22   :  { %1033 = dma.done.wait [#allocation11], 1024  }
  0x23   :  { %1034 = vsyncadd [#allocation11], 4294966272 }
  0x24   :  { %1035 = dma.done.wait [#allocation14], 1024  }
  0x25   :  { %1036 = vsyncadd [#allocation14], 4294966272  ;;  %v181_v0 = vld [vmem:[#allocation4 + $0x8] sm:$0xff]  ;;  %v1165_v1 = vld [vmem:[#allocation6 + $0x8] sm:$0xff]  ;;  %vm195_vm0 = vcmask 130048   ;;  %s1048_s9 = smov 32  }
  0x26   :  { %v180_v2 = vld [vmem:[#allocation4] sm:$0xff]  ;;  %216 = vmatpush.msra.mxu0 %v181_v0  ;;  %239 = vmatpush.msra.mxu1 %v1165_v1  ;;  %v1168_v3 = vld [vmem:[#allocation6] sm:$0xff]  ;;  %v187_v5 = vld [vmem:[#allocation9 + $0x18] sm:$0xff]  ;;  %vm277_vm1 = vcmask 261120   ;;  %s1050_s17 = smov 64  }
  0x27   :  { %v1170_v4 = vld [vmem:[#allocation2] sm:$0xff]  ;;  %v183_v6 = vld [vmem:[#allocation7 + $0x8] sm:$0xff]  ;;  %296 = vmatpush.msra.mxu3 %v187_v5  ;;  %v185_v8 = vld [vmem:[#allocation9 + $0x8] sm:$0xff]  ;;  %356 = vrot.lane.b32.xlu0 %v1165_v1, %s1048_s9 }
  0x28   :  { %217 = vmatpush.msra.mxu0 %v180_v2  ;;  %240 = vmatpush.msra.mxu1 %v1168_v3  ;;  %v186_v7 = vld [vmem:[#allocation9 + $0x10] sm:$0xff]  ;;  %v1177_v9 = vld [vmem:[#allocation2 + $0x8] sm:$0xff]  ;;  %v184_v11 = vld [vmem:[#allocation9] sm:$0xff] }
  0x29   :  { %731 = vmatmul.msk.f32.vlgmr.msra.gmra.mxu0 %vm195_vm0, %v1170_v4  ;;  %733 = vmatmul.msk.f32.vlgmr.msra.gmra.mxu1 %vm195_vm0, %v1170_v4  ;;  %v182_v10 = vld [vmem:[#allocation7] sm:$0xff]  ;;  %v191_v56 = vld [vmem:[#allocation10 + $0x18] sm:$0xff]  ;;  %v189_v58 = vld [vmem:[#allocation10 + $0x8] sm:$0xff] }
  0x2a   :  { %268 = vmatpush.msra.mxu2 %v183_v6  ;;  %297 = vmatpush.msra.mxu3 %v186_v7  ;;  %v1194_v16 = vld [vmem:[%s1305_s6] ss:$0 sm:$0xff]  ;;  %s1049_s6 = smov 96   ;;  %v188_v62 = vld [vmem:[#allocation10] sm:$0xff] }
  0x2b   :  { %v190_v57 = vld [vmem:[#allocation10 + $0x10] sm:$0xff]  ;;  %411 = vmatpush.msrb.mxu1 %v191_v56 }
  0x2c   :  { %298 = vmatpush.msra.mxu3 %v185_v8  ;;  %269 = vmatpush.msra.mxu2 %v182_v10 }
  0x2d   :  { %412 = vmatpush.msrb.mxu1 %v190_v57 }
  0x2e   :  { %299 = vmatpush.msra.mxu3 %v184_v11 }
  0x2f   :  { %354 = vrot.lane.b32.xlu0 %v1168_v3, %s1048_s9  ;;  %413 = vmatpush.msrb.mxu1 %v189_v58 }
  0x31   :  { %732 = vmatmul.msk.f32.gmra.mxu0 %vm195_vm0, %v1177_v9  ;;  %734 = vmatmul.msk.f32.gmra.mxu1 %vm195_vm0, %v1177_v9 }
  0x32   :  { %414 = vmatpush.msrb.mxu1 %v188_v62 }
  0x99   :  { %v357_v35 = vpop.permute.xlu0 %356 }
  0xa1   :  { %v355_v49 = vpop.permute.xlu0 %354 }
  0xa6   :  { %v219_v12 = vpop.f32.mrf.mxu0  ;;  %v242_v13 = vpop.f32.mrf.mxu1 }
  0xa7   :  { %735 = vmatmul.msk.f32.vlgmr.msra.gmra.mxu2 %vm195_vm0, %v219_v12  ;;  %737 = vmatmul.msk.f32.vlgmr.msra.gmra.mxu3 %vm277_vm1, %v242_v13 }
  0xae   :  { %v222_v14 = vpop.f32.mrf.mxu0  ;;  %v245_v15 = vpop.f32.mrf.mxu1 }
  0xaf   :  { %736 = vmatmul.msk.f32.gmra.mxu2 %vm195_vm0, %v222_v14  ;;  %738 = vmatmul.msk.f32.gmra.mxu3 %vm277_vm1, %v245_v15  ;;  %v1225_v15 = vld [vmem:[#allocation6 + $0x18] sm:$0xff] }
  0xb0   :  { %507 = vmatpush.msrb.mxu3 %v1225_v15 }
 0x12a   :  { %v1196_v17 = vpop.f32.mrf.mxu2  ;;  %v301_v18 = vpop.f32.mrf.mxu3 }
 0x12b   :  { %v307_v19 = vadd.f32 %v301_v18, %v1196_v17  ;;  %v461_v18 = vld [vmem:[#allocation13 + $0x18] sm:$0xff] }
 0x12c   :  { %563 = vmatpush.msra.mxu1 %v461_v18 }
 0x12d   :  { %v312_v20 = vadd.f32 %v1194_v16, %v307_v19  ;;  %v456_v19 = vld [vmem:[#allocation12 + $0x10] sm:$0xff] }
 0x12f   :  { %v739_v21 = vmul.f32 -1.442695, %v312_v20  ;;  %v460_v20 = vld [vmem:[#allocation13 + $0x10] sm:$0xff] }
 0x130   :  { %564 = vmatpush.msra.mxu1 %v460_v20  ;;  %v464_v20 = vld [vmem:[#allocation15 + $0x10] sm:$0xff] }
 0x131   :  { %787 = vpow2.f32 %v739_v21  ;;  %v455_v21 = vld [vmem:[#allocation12 + $0x8] sm:$0xff] }
 0x132   :  { %v1200_v22 = vpop.f32.mrf.mxu2  ;;  %v304_v23 = vpop.f32.mrf.mxu3 }
 0x133   :  { %v308_v24 = vadd.f32 %v304_v23, %v1200_v22 }
 0x135   :  { %v313_v25 = vadd.f32 %v1194_v16, %v308_v24 }
 0x137   :  { %v788_v26 = vpop.eup %787  ;;  %v740_v27 = vmul.f32 -1.442695, %v313_v25 }
 0x138   :  { %v320_v28 = vadd.f32 1.0, %v788_v26 }
 0x139   :  { %789 = vpow2.f32 %v740_v27 }
 0x13a   :  { %791 = vrcp.f32 %v320_v28  ;;  %v333_v39 = vand.u32 2147483648, %v320_v28  ;;  %vm327_vm3 = vweird.f32 %v320_v28  ;;  %v331_v41 = vand.u32 2147483647, %v320_v28 }
 0x13c   :  { %v334_v46 = vor.u32 1.1754944e-38, %v333_v39  ;;  %vm332_vm7 = vcmp.eq.f32.partialorder %v331_v41, 8.507059e+37 }
 0x13f   :  { %v790_v29 = vpop.eup %789 }
 0x140   :  { %v792_v30 = vpop.eup %791  ;;  %v321_v31 = vadd.f32 1.0, %v790_v29 }
 0x141   :  { %v323_v32 = vmul.f32 %v792_v30, %v320_v28  ;;  %vm328_vm2 = vweird.f32 %v792_v30 }
 0x142   :  { %793 = vrcp.f32 %v321_v31  ;;  %v348_v42 = vand.u32 2147483648, %v321_v31  ;;  %vm329_vm4 = vmor %vm327_vm3, %vm328_vm2  ;;  %v346_v44 = vand.u32 2147483647, %v321_v31  ;;  %vm342_vm6 = vweird.f32 %v321_v31 }
 0x143   :  { %v324_v33 = vsub.f32 1.0, %v323_v32 }
 0x144   :  { %v349_v48 = vor.u32 1.1754944e-38, %v348_v42  ;;  %vm347_vm9 = vcmp.eq.f32.partialorder %v346_v44, 8.507059e+37 }
 0x145   :  { %v325_v34 = vmul.f32 %v792_v30, %v324_v33  ;;  %v458_v33 = vld [vmem:[#allocation13] sm:$0xff] }
 0x147   :  { %v326_v38 = vadd.f32 %v792_v30, %v325_v34 }
 0x148   :  { %v794_v36 = vpop.eup %793 }
 0x149   :  { %v338_v37 = vmul.f32 %v794_v36, %v321_v31  ;;  %vm343_vm5 = vweird.f32 %v794_v36  ;;  %v330_v45 = vsel %vm329_vm4, %v792_v30, %v326_v38  ;;  %v1264_v38 = vld [vmem:[%s1309_s10] ss:$0 sm:$0xff] }
 0x14a   :  { %vm344_vm8 = vmor %vm342_vm6, %vm343_vm5  ;;  %v1204_v50 = vsel %vm332_vm7, %v334_v46, %v330_v45 }
 0x14b   :  { %v339_v40 = vsub.f32 1.0, %v338_v37  ;;  %v360_v54 = vmul.f32 %v355_v49, %v1204_v50  ;;  %v438_v23 = vsub.f32 1.0, %v1204_v50  ;;  %v436_v26 = vmul.f32 %v1204_v50, %v1168_v3  ;;  %v454_v3 = vld [vmem:[#allocation12] sm:$0xff] }
 0x14d   :  { %v340_v43 = vmul.f32 %v794_v36, %v339_v40 }
 0x14f   :  { %v341_v47 = vadd.f32 %v794_v36, %v340_v43 }
 0x151   :  { %v345_v51 = vsel %vm344_vm8, %v794_v36, %v341_v47 }
 0x152   :  { %v1206_v52 = vsel %vm347_vm9, %v349_v48, %v345_v51 }
 0x153   :  { %v361_v53 = vmul.f32 %v357_v35, %v1206_v52  ;;  %v439_v28 = vsub.f32 1.0, %v1206_v52  ;;  %v437_v31 = vmul.f32 %v1206_v52, %v1165_v1 }
 0x155   :  { %v775_v55 = vpack.i.bf16 %v360_v54, %v361_v53 }
 0x157   :  { %776 = vrot.lane.b32.xlu1 %v775_v55, %s1049_s6 }
 0x1c9   :  { %v777_v59 = vpop.permute.xlu1 %776 }
 0x1ca   :  { %v778_v60 = vunpack.i.l.bf16 %v777_v59  ;;  %v779_v61 = vunpack.i.h.bf16 %v777_v59 }
 0x1cc   :  { %384 = vmatpush.msrb.mxu0 %v778_v60 }
 0x1ce   :  { %385 = vmatpush.msrb.mxu0 %v779_v61 }
 0x1cf   :  { %741 = vmatmul.msk.f32.vlgmr.msrb.gmra.mxu0 %vm195_vm0, %v1170_v4 }
 0x1d7   :  { %742 = vmatmul.msk.f32.gmra.mxu0 %vm195_vm0, %v1177_v9 }
 0x24c   :  { %v387_v63 = vpop.f32.mrf.mxu0 }
 0x24d   :  { %743 = vmatmul.msk.f32.vlgmr.msrb.gmra.mxu1 %vm277_vm1, %v387_v63 }
 0x254   :  { %v390_v0 = vpop.f32.mrf.mxu0 }
 0x255   :  { %744 = vmatmul.msk.f32.gmra.mxu1 %vm277_vm1, %v390_v0 }
 0x2ca   :  { %v416_v2 = vpop.f32.mrf.mxu1 }
 0x2cb   :  { %424 = vrot.lane.b32.xlu2 %v416_v2, %s1050_s17 }
 0x2d2   :  { %v419_v5 = vpop.f32.mrf.mxu1 }
 0x2d3   :  { %426 = vrot.lane.b32.xlu1 %v419_v5, %s1050_s17 }
 0x2db   :  { %623 = vrot.lane.b32.xlu1 %v1225_v15, %s1048_s9 }
 0x325   :  { %v425_v6 = vpop.permute.xlu2 %424 }
 0x326   :  { %v430_v7 = vadd.f32 %v425_v6, %v1196_v17  ;;  %v1230_v17 = vld [vmem:[#allocation6 + $0x10] sm:$0xff] }
 0x327   :  { %508 = vmatpush.msrb.mxu3 %v1230_v17 }
 0x328   :  { %v432_v8 = vadd.f32 %v1194_v16, %v430_v7  ;;  %747 = vmatmul.msk.f32.vlgmr.msrb.gmra.mxu3 %vm195_vm0, %v1170_v4 }
 0x32a   :  { %795 = vtanh.f32 %v432_v8 }
 0x330   :  { %v796_v10 = vpop.eup %795  ;;  %748 = vmatmul.msk.f32.gmra.mxu3 %vm195_vm0, %v1177_v9 }
 0x331   :  { %442 = vrot.lane.b32.xlu0 %v796_v10, %s1050_s17 }
 0x345   :  { %v427_v11 = vpop.permute.xlu1 %426 }
 0x346   :  { %v431_v12 = vadd.f32 %v427_v11, %v1200_v22  ;;  %v459_v22 = vld [vmem:[#allocation13 + $0x8] sm:$0xff] }
 0x347   :  { %565 = vmatpush.msra.mxu1 %v459_v22 }
 0x348   :  { %v433_v13 = vadd.f32 %v1194_v16, %v431_v12  ;;  %v457_v16 = vld [vmem:[#allocation12 + $0x18] sm:$0xff] }
 0x349   :  { %534 = vmatpush.msra.mxu0 %v457_v16  ;;  %566 = vmatpush.msra.mxu1 %v458_v33 }
 0x34a   :  { %797 = vtanh.f32 %v433_v13 }
 0x34b   :  { %535 = vmatpush.msra.mxu0 %v456_v19  ;;  %v465_v19 = vld [vmem:[#allocation15 + $0x18] sm:$0xff] }
 0x34c   :  { %678 = vmatpush.msra.mxu3 %v465_v19 }
 0x34d   :  { %536 = vmatpush.msra.mxu0 %v455_v21  ;;  %v624_v10 = vpop.permute.xlu1 %623  ;;  %v463_v21 = vld [vmem:[#allocation15 + $0x8] sm:$0xff] }
 0x34e   :  { %679 = vmatpush.msra.mxu3 %v464_v20 }
 0x34f   :  { %537 = vmatpush.msra.mxu0 %v454_v3 }
 0x350   :  { %v798_v14 = vpop.eup %797  ;;  %680 = vmatpush.msra.mxu3 %v463_v21 }
 0x351   :  { %444 = vrot.lane.b32.xlu2 %v798_v14, %s1050_s17 }
 0x359   :  { %621 = vrot.lane.b32.xlu2 %v1230_v17, %s1048_s9 }
 0x3a3   :  { %v443_v24 = vpop.permute.xlu0 %442 }
 0x3a4   :  { %v448_v25 = vmul.f32 %v443_v24, %v438_v23 }
 0x3a6   :  { %v450_v27 = vadd.f32 %v448_v25, %v436_v26  ;;  %v462_v25 = vld [vmem:[#allocation15] sm:$0xff] }
 0x3a7   :  { %681 = vmatpush.msra.mxu3 %v462_v25 }
 0x3a8   :  { %452 = vst.msk [vmem:[%s1310_s11] sm:$0xff] %vm277_vm1, %v450_v27 }
 0x3ab   :  { %v445_v29 = vpop.permute.xlu2 %444  ;;  %v510_v34 = vpop.f32.mrf.mxu3 }
 0x3ac   :  { %v449_v30 = vmul.f32 %v445_v29, %v439_v28  ;;  %751 = vmatmul.msk.f32.vlgmr.msra.gmra.mxu1 %vm277_vm1, %v510_v34 }
 0x3ae   :  { %v451_v32 = vadd.f32 %v449_v30, %v437_v31 }
 0x3b0   :  { %453 = vst.msk [vmem:[%s1310_s11 + $0x8] sm:$0xff] %vm277_vm1, %v451_v32  ;;  %484 = vmatpush.msrb.mxu2 %v451_v32 }
 0x3b2   :  { %485 = vmatpush.msrb.mxu2 %v450_v27 }
 0x3b3   :  { %745 = vmatmul.msk.f32.vlgmr.msrb.gmra.mxu2 %vm195_vm0, %v1170_v4  ;;  %v513_v1 = vpop.f32.mrf.mxu3  ;;  %v622_v7 = vpop.permute.xlu2 %621 }
 0x3b4   :  { %752 = vmatmul.msk.f32.gmra.mxu1 %vm277_vm1, %v513_v1 }
 0x3bb   :  { %746 = vmatmul.msk.f32.gmra.mxu2 %vm195_vm0, %v1177_v9 }
 0x429   :  { %v568_v37 = vpop.f32.mrf.mxu1 }
 0x431   :  { %v571_v43 = vpop.f32.mrf.mxu1 }
 0x436   :  { %v487_v35 = vpop.f32.mrf.mxu2 }
 0x437   :  { %749 = vmatmul.msk.f32.vlgmr.msra.gmra.mxu0 %vm277_vm1, %v487_v35 }
 0x43e   :  { %v490_v36 = vpop.f32.mrf.mxu2 }
 0x43f   :  { %750 = vmatmul.msk.f32.gmra.mxu0 %vm277_vm1, %v490_v36 }
 0x4b4   :  { %v1266_v39 = vpop.f32.mrf.mxu0 }
 0x4b5   :  { %v574_v40 = vadd.f32 %v568_v37, %v1266_v39 }
 0x4b7   :  { %v579_v41 = vadd.f32 %v1264_v38, %v574_v40 }
 0x4b9   :  { %v753_v42 = vmul.f32 -1.442695, %v579_v41 }
 0x4bb   :  { %799 = vpow2.f32 %v753_v42 }
 0x4bc   :  { %v1270_v44 = vpop.f32.mrf.mxu0 }
 0x4bd   :  { %v575_v45 = vadd.f32 %v571_v43, %v1270_v44 }
 0x4bf   :  { %v580_v46 = vadd.f32 %v1264_v38, %v575_v45 }
 0x4c1   :  { %v800_v47 = vpop.eup %799  ;;  %v754_v48 = vmul.f32 -1.442695, %v580_v46 }
 0x4c2   :  { %v587_v49 = vadd.f32 1.0, %v800_v47 }
 0x4c3   :  { %801 = vpow2.f32 %v754_v48 }
 0x4c4   :  { %803 = vrcp.f32 %v587_v49  ;;  %v600_v59 = vand.u32 2147483648, %v587_v49  ;;  %vm594_vm11 = vweird.f32 %v587_v49  ;;  %v598_v60 = vand.u32 2147483647, %v587_v49 }
 0x4c6   :  { %v601_v5 = vor.u32 1.1754944e-38, %v600_v59  ;;  %vm599_vm14 = vcmp.eq.f32.partialorder %v598_v60, 8.507059e+37 }
 0x4c9   :  { %v802_v50 = vpop.eup %801 }
 0x4ca   :  { %v804_v51 = vpop.eup %803  ;;  %v588_v52 = vadd.f32 1.0, %v802_v50 }
 0x4cb   :  { %v590_v53 = vmul.f32 %v804_v51, %v587_v49  ;;  %vm595_vm10 = vweird.f32 %v804_v51 }
 0x4cc   :  { %805 = vrcp.f32 %v588_v52  ;;  %vm596_vm12 = vmor %vm594_vm11, %vm595_vm10  ;;  %v615_v62 = vand.u32 2147483648, %v588_v52  ;;  %v613_v2 = vand.u32 2147483647, %v588_v52  ;;  %vm609_vm15 = vweird.f32 %v588_v52 }
 0x4cd   :  { %v591_v54 = vsub.f32 1.0, %v590_v53 }
 0x4ce   :  { %v616_v11 = vor.u32 1.1754944e-38, %v615_v62  ;;  %vm614_vm3 = vcmp.eq.f32.partialorder %v613_v2, 8.507059e+37 }
 0x4cf   :  { %v592_v55 = vmul.f32 %v804_v51, %v591_v54 }
 0x4d1   :  { %v593_v57 = vadd.f32 %v804_v51, %v592_v55 }
 0x4d2   :  { %v806_v56 = vpop.eup %805 }
 0x4d3   :  { %v605_v58 = vmul.f32 %v806_v56, %v588_v52  ;;  %v597_v63 = vsel %vm596_vm12, %v804_v51, %v593_v57  ;;  %vm610_vm13 = vweird.f32 %v806_v56 }
 0x4d4   :  { %v602_v8 = vsel %vm599_vm14, %v601_v5, %v597_v63  ;;  %vm611_vm2 = vmor %vm609_vm15, %vm610_vm13 }
 0x4d5   :  { %v606_v61 = vsub.f32 1.0, %v605_v58  ;;  %v627_v14 = vmul.f32 %v622_v7, %v602_v8  ;;  %v705_v41 = vsub.f32 1.0, %v602_v8 }
 0x4d7   :  { %v607_v0 = vmul.f32 %v806_v56, %v606_v61 }
 0x4d9   :  { %v608_v6 = vadd.f32 %v806_v56, %v607_v0 }
 0x4db   :  { %v612_v12 = vsel %vm611_vm2, %v806_v56, %v608_v6 }
 0x4dc   :  { %v617_v13 = vsel %vm614_vm3, %v616_v11, %v612_v12 }
 0x4dd   :  { %v628_v16 = vmul.f32 %v624_v10, %v617_v13  ;;  %v706_v1 = vsub.f32 1.0, %v617_v13  ;;  %v704_v36 = vmul.f32 %v617_v13, %v1225_v15 }
 0x4df   :  { %v780_v18 = vpack.i.bf16 %v627_v14, %v628_v16 }
 0x4e1   :  { %781 = vrot.lane.b32.xlu0 %v780_v18, %s1049_s6 }
 0x553   :  { %v782_v22 = vpop.permute.xlu0 %781 }
 0x554   :  { %v783_v23 = vunpack.i.l.bf16 %v782_v22  ;;  %v784_v24 = vunpack.i.h.bf16 %v782_v22 }
 0x556   :  { %651 = vmatpush.msra.mxu2 %v783_v23 }
 0x558   :  { %652 = vmatpush.msra.mxu2 %v784_v24 }
 0x559   :  { %755 = vmatmul.msk.f32.vlgmr.msra.gmra.mxu2 %vm195_vm0, %v1170_v4 }
 0x561   :  { %756 = vmatmul.msk.f32.gmra.mxu2 %vm195_vm0, %v1177_v9 }
 0x5dc   :  { %v654_v26 = vpop.f32.mrf.mxu2 }
 0x5dd   :  { %757 = vmatmul.msk.f32.vlgmr.msra.gmra.mxu3 %vm277_vm1, %v654_v26 }
 0x5e4   :  { %v657_v27 = vpop.f32.mrf.mxu2 }
 0x5e5   :  { %758 = vmatmul.msk.f32.gmra.mxu3 %vm277_vm1, %v657_v27 }
 0x660   :  { %v683_v28 = vpop.f32.mrf.mxu3 }
 0x661   :  { %691 = vrot.lane.b32.xlu1 %v683_v28, %s1050_s17 }
 0x668   :  { %v686_v29 = vpop.f32.mrf.mxu3 }
 0x669   :  { %693 = vrot.lane.b32.xlu2 %v686_v29, %s1050_s17 }
 0x6c3   :  { %v694_v30 = vpop.permute.xlu2 %693 }
 0x6c4   :  { %v698_v4 = vadd.f32 %v694_v30, %v1270_v44 }
 0x6c6   :  { %v700_v31 = vadd.f32 %v1264_v38, %v698_v4 }
 0x6c8   :  { %807 = vtanh.f32 %v700_v31 }
 0x6ce   :  { %v808_v9 = vpop.eup %807 }
 0x6cf   :  { %711 = vrot.lane.b32.xlu1 %v808_v9, %s1050_s17 }
 0x6d3   :  { %v692_v32 = vpop.permute.xlu1 %691 }
 0x6d4   :  { %v697_v3 = vadd.f32 %v692_v32, %v1266_v39  ;;  %v703_v39 = vmul.f32 %v602_v8, %v1230_v17 }
 0x6d6   :  { %v699_v33 = vadd.f32 %v1264_v38, %v697_v3 }
 0x6d8   :  { %809 = vtanh.f32 %v699_v33 }
 0x6de   :  { %v810_v34 = vpop.eup %809 }
 0x6df   :  { %709 = vrot.lane.b32.xlu0 %v810_v34, %s1050_s17 }
 0x741   :  { %v712_v35 = vpop.permute.xlu1 %711 }
 0x742   :  { %v716_v37 = vmul.f32 %v712_v35, %v706_v1 }
 0x744   :  { %v718_v40 = vadd.f32 %v716_v37, %v704_v36 }
 0x746   :  { %760 = vst.msk [vmem:[%s1310_s11 + $0x18] sm:$0xff] %vm277_vm1, %v718_v40 }
 0x751   :  { %v710_v42 = vpop.permute.xlu0 %709 }
 0x752   :  { %v715_v38 = vmul.f32 %v710_v42, %v705_v41 }
 0x754   :  { %v717_v43 = vadd.f32 %v715_v38, %v703_v39 }
 0x756   :  { %759 = vst.msk [vmem:[%s1310_s11 + $0x10] sm:$0xff] %vm277_vm1, %v717_v43 }
 0x757   :  { %726 = vsyncpa [#allocation3], 1 }
 0x758   :  { %727 = vsyncpa [#allocation5], 1 }
 0x759   :  { %728 = vsyncpa [#allocation8], 1 }
 0x75a   :  { %729 = vsyncpa [#allocation11], 1 }
 0x75b   :  { %730 = vsyncpa [#allocation14], 1 }

</bundles_post_ra>
